<compile_context>
chip_gen: v6e
topology: v6e:2x2x1
jax: 0.10.0
libtpu: 0.0.40
codegen_flags: <defaults>
</compile_context>

<pallas_src>
import jax
import jax.numpy as jnp
from jax import lax
from jax.experimental import pallas as pl
from jax.experimental.pallas import tpu as pltpu


def _dwblock_kernel(p_ref, w_ref, b_ref, a_ref, o_ref):
    # p_ref: (1, K, HW)    im2col patches for one image (K = 9*Cin, HW lane-dense)
    # w_ref: (Cout, K)     fused depthwise*pointwise weights (+ residual identity)
    # b_ref: (Cout, 1)     fused bias (pw_b + dw_b @ pw_w)
    # a_ref: (Cout, 1)     PReLU per-channel slope
    # o_ref: (1, Cout, HW) lane-dense output
    z = jnp.dot(w_ref[...], p_ref[0],
                preferred_element_type=jnp.float32) + b_ref[...]   # (Cout, HW)
    o_ref[0] = jnp.where(z >= 0.0, z, a_ref[...] * z)              # PReLU


def dwblock_forward(x_nchw, params):
    """x_nchw: (B, Cin, H, W) float32. Returns (B, Cout, H, W)."""
    dww, dwb, pww, pwb, alpha = params
    B, Cin, H, W = x_nchw.shape
    Cout = pww.shape[1]
    HW = H * W
    K = 9 * Cin
    assert Cout >= Cin, "residual channel-pad fold requires out_channels >= in_channels"

    # --- fold depthwise + pointwise + residual into one (Cout, 9*Cin) weight ---
    dww_flat = dww.reshape(9, Cin)                                       # [tap, c]
    w_taps = dww_flat[:, :, None] * pww[None, :, :]                      # (9, Cin, Cout)
    w_taps = w_taps.at[4].add(jnp.eye(Cin, Cout, dtype=jnp.float32))     # centre tap: + zero-padded residual
    w_fused = w_taps.reshape(K, Cout).T                                  # (Cout, K), K index = tap*Cin + c
    b_fused = (pwb + dwb @ pww).reshape(Cout, 1)                         # fused bias
    alpha2 = alpha.reshape(Cout, 1)

    # --- im2col straight from NCHW (wrapper-side): patches[b, tap*Cin+c, h*W+w] ---
    xpad = jnp.pad(x_nchw.astype(jnp.float32), ((0, 0), (0, 0), (1, 1), (1, 1)))
    patches = jnp.stack(
        [xpad[:, :, dh:dh + H, dw:dw + W] for dh in range(3) for dw in range(3)],
        axis=1)                                                          # (B, 9, Cin, H, W)
    patches = patches.reshape(B, K, HW)                                  # (B, 9*Cin, H*W)

    cost = pl.CostEstimate(
        flops=2 * B * HW * K * Cout,
        transcendentals=0,
        bytes_accessed=4 * (patches.size + w_fused.size + B * Cout * HW + 2 * Cout),
    )

    out = pl.pallas_call(
        _dwblock_kernel,
        out_shape=jax.ShapeDtypeStruct((B, Cout, HW), jnp.float32),
        grid_spec=pltpu.PrefetchScalarGridSpec(
            num_scalar_prefetch=0,
            grid=(B,),
            in_specs=[
                pl.BlockSpec((1, K, HW), lambda b: (b, 0, 0)),
                pl.BlockSpec((Cout, K), lambda b: (0, 0)),
                pl.BlockSpec((Cout, 1), lambda b: (0, 0)),
                pl.BlockSpec((Cout, 1), lambda b: (0, 0)),
            ],
            out_specs=pl.BlockSpec((1, Cout, HW), lambda b: (b, 0, 0)),
        ),
        compiler_params=pltpu.CompilerParams(dimension_semantics=("parallel",)),
        cost_estimate=cost,
    )(patches, w_fused, b_fused, alpha2)

    return out.reshape(B, Cout, H, W)                 # already NCHW-ordered: free reshape


def dwblock_reference(x_nchw, params):
    """Pure-JAX reference matching the PyTorch DWBlock forward (stride=1)."""
    dww, dwb, pww, pwb, alpha = params
    B, Cin, H, W = x_nchw.shape
    Cout = pww.shape[1]
    x = jnp.transpose(x_nchw, (0, 2, 3, 1))           # NHWC
    k_dw = dww.reshape(3, 3, 1, Cin)                  # HWIO, grouped
    h = lax.conv_general_dilated(
        x, k_dw, window_strides=(1, 1), padding="SAME",
        dimension_numbers=("NHWC", "HWIO", "NHWC"),
        feature_group_count=Cin) + dwb
    z = jnp.einsum("bhwc,cd->bhwd", h, pww) + pwb
    z = z + jnp.pad(x, ((0, 0), (0, 0), (0, 0), (0, Cout - Cin)))
    y = jnp.where(z >= 0, z, alpha * z)               # PReLU, per-channel alpha
    return jnp.transpose(y, (0, 3, 1, 2))             # NCHW


if __name__ == "__main__":
    B, Cin, Cout, H, W = 2, 8, 32, 16, 16

    key = jax.random.PRNGKey(0)
    k = jax.random.split(key, 6)
    x = jax.random.normal(k[0], (B, Cin, H, W), jnp.float32)

    # synthetic deterministic parameters (shapes implied by DWBlock.__init__)
    dww = jax.random.normal(k[1], (3, 3, Cin), jnp.float32) * 0.2     # depthwise weight (per-channel 3x3)
    dwb = jax.random.normal(k[2], (Cin,), jnp.float32) * 0.1          # depthwise bias
    pww = jax.random.normal(k[3], (Cin, Cout), jnp.float32) * 0.2     # pointwise weight (Cin -> Cout)
    pwb = jax.random.normal(k[4], (Cout,), jnp.float32) * 0.1         # pointwise bias
    alpha = jnp.full((Cout,), 0.25, jnp.float32)                      # PReLU(out_channels) default slope
    params = (dww, dwb, pww, pwb, alpha)

    out = jax.block_until_ready(dwblock_forward(x, params))
    ref = jax.block_until_ready(dwblock_reference(x, params))

    assert out.shape == (B, Cout, H, W)
    assert jnp.allclose(out, ref, atol=1e-4, rtol=1e-4), "mismatch vs reference"

    print("KERNEL_OK")
</pallas_src>

<mosaic_0001>
module attributes {stable_mosaic.version = 11 : i64} {
  func.func @_dwblock_kernel(%arg0: i32, %arg1: memref<1x72x256xf32, #tpu.memory_space<vmem>>, %arg2: memref<32x72xf32, #tpu.memory_space<vmem>>, %arg3: memref<32x1xf32, #tpu.memory_space<vmem>>, %arg4: memref<32x1xf32, #tpu.memory_space<vmem>>, %arg5: memref<1x32x256xf32, #tpu.memory_space<vmem>>) attributes {dimension_semantics = [#tpu.dimension_semantics<parallel>], iteration_bounds = array<i64: 2>, scalar_prefetch = 0 : i64, scratch_operands = 0 : i64, tpu.core_type = #tpu.core_type<tc>, window_params = [{transform_indices = @transform_0, window_bounds = array<i64: 1, 72, 256>}, {pipeline_mode = #tpu.pipeline_mode<synchronous>, transform_indices = @transform_1, window_bounds = array<i64: 32, 72>}, {pipeline_mode = #tpu.pipeline_mode<synchronous>, transform_indices = @transform_2, window_bounds = array<i64: 32, 1>}, {pipeline_mode = #tpu.pipeline_mode<synchronous>, transform_indices = @transform_3, window_bounds = array<i64: 32, 1>}, {transform_indices = @transform_4, window_bounds = array<i64: 1, 32, 256>}]} {
    %c0 = arith.constant 0 : index
    %c0_0 = arith.constant 0 : index
    %0 = vector.load %arg2[%c0, %c0_0] : memref<32x72xf32, #tpu.memory_space<vmem>>, vector<32x72xf32>
    %c0_1 = arith.constant 0 : index
    %c0_2 = arith.constant 0 : index
    %c0_3 = arith.constant 0 : index
    %1 = vector.load %arg1[%c0_1, %c0_2, %c0_3] : memref<1x72x256xf32, #tpu.memory_space<vmem>>, vector<1x72x256xf32>
    %2 = vector.shape_cast %1 : vector<1x72x256xf32> to vector<72x256xf32>
    %cst = arith.constant dense<0.000000e+00> : vector<32x256xf32>
    %3 = tpu.matmul %0, %2, %cst {dimension_numbers = #tpu.dot_dimension_numbers<[1], [0], [0], [1], [0, 0, 1, 1], [], []>} : vector<32x72xf32>, vector<72x256xf32>, vector<32x256xf32> -> vector<32x256xf32>
    %c0_4 = arith.constant 0 : index
    %c0_5 = arith.constant 0 : index
    %4 = vector.load %arg3[%c0_4, %c0_5] : memref<32x1xf32, #tpu.memory_space<vmem>>, vector<32x1xf32>
    %5 = vector.broadcast %4 : vector<32x1xf32> to vector<32x256xf32>
    %6 = arith.addf %3, %5 : vector<32x256xf32>
    %cst_6 = arith.constant 0.000000e+00 : f32
    %7 = vector.broadcast %cst_6 : f32 to vector<32x256xf32>
    %8 = arith.cmpf oge, %6, %7 : vector<32x256xf32>
    %c0_7 = arith.constant 0 : index
    %c0_8 = arith.constant 0 : index
    %9 = vector.load %arg4[%c0_7, %c0_8] : memref<32x1xf32, #tpu.memory_space<vmem>>, vector<32x1xf32>
    %10 = vector.broadcast %9 : vector<32x1xf32> to vector<32x256xf32>
    %11 = arith.mulf %10, %6 : vector<32x256xf32>
    %12 = arith.select %8, %6, %11 : vector<32x256xi1>, vector<32x256xf32>
    %c0_9 = arith.constant 0 : index
    %c0_10 = arith.constant 0 : index
    %c0_11 = arith.constant 0 : index
    %13 = vector.load %arg5[%c0_9, %c0_10, %c0_11] : memref<1x32x256xf32, #tpu.memory_space<vmem>>, vector<1x32x256xf32>
    %14 = vector.shape_cast %13 : vector<1x32x256xf32> to vector<32x256xf32>
    %15 = vector.shape_cast %12 : vector<32x256xf32> to vector<1x32x256xf32>
    tpu.vector_store %arg5[%c0_9, %c0_10, %c0_11], %15 {strides = array<i32>} : memref<1x32x256xf32, #tpu.memory_space<vmem>>, vector<1x32x256xf32>,
    return
  }
  func.func @transform_0(%arg0: i32) -> (i32, i32, i32) {
    %c0_i32 = arith.constant 0 : i32
    %c0_i32_0 = arith.constant 0 : i32
    %c0_i32_1 = arith.constant 0 : i32
    return %arg0, %c0_i32, %c0_i32_0 : i32, i32, i32
  }
  func.func @transform_1(%arg0: i32) -> (i32, i32) {
    %c0_i32 = arith.constant 0 : i32
    %c0_i32_0 = arith.constant 0 : i32
    %c0_i32_1 = arith.constant 0 : i32
    return %c0_i32, %c0_i32_0 : i32, i32
  }
  func.func @transform_2(%arg0: i32) -> (i32, i32) {
    %c0_i32 = arith.constant 0 : i32
    %c0_i32_0 = arith.constant 0 : i32
    %c0_i32_1 = arith.constant 0 : i32
    return %c0_i32, %c0_i32_0 : i32, i32
  }
  func.func @transform_3(%arg0: i32) -> (i32, i32) {
    %c0_i32 = arith.constant 0 : i32
    %c0_i32_0 = arith.constant 0 : i32
    %c0_i32_1 = arith.constant 0 : i32
    return %c0_i32, %c0_i32_0 : i32, i32
  }
  func.func @transform_4(%arg0: i32) -> (i32, i32, i32) {
    %c0_i32 = arith.constant 0 : i32
    %c0_i32_0 = arith.constant 0 : i32
    %c0_i32_1 = arith.constant 0 : i32
    return %arg0, %c0_i32, %c0_i32_0 : i32, i32, i32
  }
}

</mosaic_0001>

<bundles_post_ra>
// kernel: tpu_custom_call.1
= control target key start
LH: loop header
LB: loop body
LE: loop exit
PB: predicated region body
PF: predicated region fallthrough
CT: control target
= control target key end

     0   :  { %9 = vsyncpa [#allocation3], 0  ;;  %s949_s0 = inlined_call_operand.hbm [shape: f32[2,72,256], index: 0, kind: input, shape index: {}]   ;;  %s950_s1 = inlined_call_operand.vmem [shape: f32[32,72], index: 1, kind: input, shape index: {}]   ;;  %s951_s2 = inlined_call_operand.vmem [shape: f32[32,1], index: 2, kind: input, shape index: {}]   ;;  %s952_s3 = inlined_call_operand.vmem [shape: f32[32,1], index: 3, kind: input, shape index: {}]   ;;  %s953_s4 = inlined_call_operand.hbm [shape: f32[2,32,256], index: 4, kind: output, shape index: {}]  }
   0x1   :  { %11 = vsyncpa [#allocation3 + $0x1], 0 }
   0x2   :  { %12 = vsyncpa [#allocation4], 0 }
   0x3   :  { %14 = vsyncpa [#allocation4 + $0x1], 0  ;;  %s725_s15 = smov 0   ;;  %s727_s16 = smov 0  }
   0x4   :  { %s729_s17 = smov 0   ;;  %s731_s18 = smov 0  }
   0x5 LB: > { %s746_s19 = sadd.s32 4294967295, %s690_s18   ;;  %s507_s20 = sadd.s32 4294967294, %s690_s18   ;;  %s690_s18 = sphi %s731_s18, %s967_s18   ;;  %s686_s17 = sphi %s729_s17, %s966_s17   ;;  %s682_s16 = sphi %s727_s16, %s965_s16   ;;  %s678_s15 = sphi %s725_s15, %s964_s15  }
   0x6   : > { %s750_s21 = sadd.s32 1, %s690_s18   ;;  %s27_s22 = sadd.s32 1, %s686_s17 }
   0x7   : > { %s24_s23 = ssub.s32 %s690_s18, %s750_s21  ;;  %p34_p0 = scmp.ne.s32.totalorder %s686_s17, %s682_s16 }
   0x8   : > { %p25_p1 = scmp.eq.s32.totalorder %s24_s23, 0  ;;  %p35_p2 = scmp.eq.s32.totalorder %s690_s18, 0 }
   0x9   : > { %p40_p3 = scmp.ne.s32.totalorder %s682_s16, %s678_s15  ;;  %p41_p4 = scmp.eq.s32.totalorder %s746_s19, 0 }
   0xa   : > { %s762_s24 = scalar_select %p25_p1, %s686_s17, %s27_s22  }
   0xb   : > { %p36_p5 = por %p35_p2, %p34_p0  ;;  %p764_p6 = por %p41_p4, %p40_p3 }
   0xc   : > { %p127_p7 = scmp.eq.s32.totalorder %s746_s19, 1  ;;  %p133_p8 = scmp.eq.s32.totalorder %s507_s20, 1 }
   0xd   : > { %s956_s25 = scalar_select %p764_p6, 1, 0 }
   0xe   : > { %p556_p10 = scmp.lt.s32.totalorder %s690_s18, 2  ;;  %p771_p11 = por %p127_p7, %p34_p0 }
   0xf   : > { %p775_p12 = por %p133_p8, %p40_p3  ;;  %s162_s28 = sand.u32 1, %s686_s17  }
  0x10   : > { %s957_s26 = scalar_select %p771_p11, 1, 0 }
  0x11   : > { %s958_s27 = scalar_select %p775_p12, 1, 0 }
  0x12   : > { %s542_s29 = smul.u32 2304, %s690_s18  ;;  %p786_p13 = pnand %p556_p10, %p36_p5 }
  0x13   : > { %s541_s30 = smul.u32 144, %s162_s28  ;;  %s792_s11 = scalar_lea.sflag [#allocation3], %s162_s28 }
  0x14   : > { %s784_s7 = scalar_lea.hbm %s949_s0, %s542_s29  ;;  %p600_p1 = pneg %p786_p13 }
  0x15   : > { %s166_s9 = scalar_lea.vmem [#allocation2], %s541_s30  ;;  %s598_s12 = scalar_lea.hbm %s784_s7, 2304 }
  0x16   : > { %s173_s10 = sshll.u32 %s166_s9, 4  ;;  %p599_p0 = scmp.ne.s32.totalorder %s784_s7, %s598_s12  ;;  %s790_s10 = int_to_ptr.vmem [resolvable:$true] %s173_s10 }
  0x17   : > { %s603_s20 = scalar_lea.hbm %s949_s0, 4608  ;;  %p604_p4 = scmp.lt.s32.totalorder %s784_s7, %s949_s0 }
  0x18   : > { %p601_p2 = pnand %p600_p1, %p599_p0  ;;  %p605_p5 = scmp.lt.s32.totalorder %s603_s20, %s598_s12 }
  0x1a   : > { %p602_p3 = pneg %p601_p2  ;;  %p606_p7 = por %p605_p5, %p604_p4 }
  0x1c   : > { %p607_p8 = pnand %p606_p7, %p602_p3 }
  0x1e   : > { %610 = shalt.err (!%p607_p8)
}
  0x1f   : > { %s611_s28 = scalar_lea.vmem %s790_s10, 2304  ;;  %s692_s29 = smov [#allocation2]  }
  0x20   : > { %p612_p10 = scmp.ne.s32.totalorder %s790_s10, %s611_s28  ;;  %s616_s30 = sshll.u32 %s692_s29, 4  ;;  %s617_s30 = int_to_ptr.vmem [resolvable:$false] %s616_s30 }
  0x21   : > { %s618_s5 = scalar_lea.vmem %s617_s30, 4608  ;;  %p619_p2 = scmp.lt.s32.totalorder %s790_s10, %s617_s30 }
  0x22   : > { %p614_p9 = pnand %p612_p10, %p600_p1  ;;  %p620_p12 = scmp.lt.s32.totalorder %s618_s5, %s611_s28 }
  0x24   : > { %p615_p0 = pneg %p614_p9  ;;  %p621_p11 = por %p620_p12, %p619_p2 }
  0x26   : > { %p622_p6 = pnand %p621_p11, %p615_p0 }
  0x28   : > { %625 = shalt.err (!%p622_p6)
}
  0x29   : > { %s693_s6 = smov 256   ;;  %s694_s9 = smov 16  }
  0x2a   : > { %551 = dma.hbm_to_vmem [thread:$0]  (!%p786_p13), %s784_s7, 2304, %s790_s10, %s792_s11, %s693_s6, %s693_s6, %s694_s9  }
  0x2b   : > { %p511_p9 = scmp.ge.s32.totalorder %s690_s18, 1  ;;  %p181_p1 = scmp.lt.s32.totalorder %s690_s18, 3 }
  0x2d   : > { %p182_p3 = pnand %p511_p9, %p181_p1 }
  0x2e   : > { %s816_s12 = sand.u32 (!%p182_p3), 1, %s682_s16   ;;  %p960_p6 = scmp.ne.s32.totalorder (!%p182_p3), %s956_s25, 0 }
  0x2f   : > { %185 = sbr.rel (%p182_p3) target bundleno = 293 (0x125), region = 36  ;;  %s188_s14 = scalar_lea.sflag (!%p182_p3), [#allocation3], %s816_s12 }
  0x30   : > { %s543_s13 = smul.u32 (!%p182_p3), 144, %s816_s12 }
  0x32   : > { %s820_s20 = scalar_lea.vmem (!%p182_p3), [#allocation2], %s543_s13 }
  0x34   : > { %669 = dma.done.wait (%p960_p6), %s188_s14, 2304  }
  0x35   : > { %671 = vsyncadd (%p960_p6), %s188_s14, 4294964992  ;;  %v695_v0 = vmov 0.0   ;;  %v696_v1 = vmov 0   ;;  %v237_v2 = vld [vmem:[%s820_s20 + $0x88] sm:$0xff]  ;;  %v236_v3 = vld [vmem:[%s820_s20 + $0x80] sm:$0xff]  ;;  %vm262_vm0 = vcmask 588800  }
  0x36   : > { %339 = vmatprep.mubr.f32.mxu0 %v695_v0  ;;  %351 = vmatprep.mubr.f32.mxu1 %v695_v0  ;;  %v235_v4 = vld [vmem:[%s820_s20 + $0x78] sm:$0xff]  ;;  %v234_v5 = vld [vmem:[%s820_s20 + $0x70] sm:$0xff]  ;;  %v233_v6 = vld [vmem:[%s820_s20 + $0x68] sm:$0xff]  ;;  %s512_s29 = sshll.u32 %s816_s12, 6  ;;  %s522_s6 = sshll.u32 %s746_s19, 10 }
  0x37   : > { %597 = vset.pattern.permute.xlu1 %v696_v1  ;;  %596 = vset.pattern.permute.xlu0 %v696_v1  ;;  %v232_v7 = vld [vmem:[%s820_s20 + $0x60] sm:$0xff]  ;;  %v231_v8 = vld [vmem:[%s820_s20 + $0x58] sm:$0xff]  ;;  %v230_v9 = vld [vmem:[%s820_s20 + $0x50] sm:$0xff]  ;;  %s889_s30 = scalar_lea.vmem [#allocation5], %s512_s29  ;;  %s904_s13 = scalar_lea.hbm %s953_s4, %s522_s6 }
  0x38   : > { %289 = vmatprep.subr.mxu0 %v237_v2  ;;  %523 = vmatprep.subr.mxu1 %v237_v2  ;;  %v229_v10 = vld [vmem:[%s820_s20 + $0x48] sm:$0xff]  ;;  %v228_v11 = vld [vmem:[%s820_s20 + $0x40] sm:$0xff]  ;;  %v227_v12 = vld [vmem:[%s820_s20 + $0x38] sm:$0xff]  ;;  %s434_s5 = sshll.u32 %s889_s30, 4  ;;  %s421_s14 = scalar_lea.sflag [#allocation4], %s816_s12  ;;  %s895_s5 = int_to_ptr.vmem [resolvable:$true] %s434_s5 }
  0x39   : > { %290 = vmatpush1.msra.mxu0 %v236_v3  ;;  %532 = vmatpush1.msra.mxu1 %v236_v3  ;;  %v226_v13 = vld [vmem:[%s820_s20 + $0x30] sm:$0xff]  ;;  %v225_v14 = vld [vmem:[%s820_s20 + $0x28] sm:$0xff]  ;;  %v224_v15 = vld [vmem:[%s820_s20 + $0x20] sm:$0xff]  ;;  %p961_p12 = scmp.ne.s32.totalorder %s957_s26, 0  ;;  %s697_s25 = smov [#allocation5]  }
  0x3a   : > { %291 = vmatprep.subr.mxu0 %v235_v4  ;;  %524 = vmatprep.subr.mxu1 %v235_v4  ;;  %v223_v16 = vld [vmem:[%s820_s20 + $0x18] sm:$0xff]  ;;  %v222_v17 = vld [vmem:[%s820_s20 + $0x10] sm:$0xff]  ;;  %v221_v18 = vld [vmem:[%s820_s20 + $0x8] sm:$0xff]  ;;  %s630_s7 = sshll.u32 %s697_s25, 4  ;;  %s631_s7 = int_to_ptr.vmem [resolvable:$false] %s630_s7 }
  0x3b   : > { %292 = vmatpush1.msra.mxu0 %v234_v5  ;;  %533 = vmatpush1.msra.mxu1 %v234_v5  ;;  %v220_v19 = vld [vmem:[%s820_s20] sm:$0xff]  ;;  %v217_v24 = vld [vmem:[%s950_s1 + $0x8] sm:$0xff]  ;;  %v219_v25 = vld [vmem:[%s950_s1 + $0x18] sm:$0xff]  ;;  %s626_s20 = scalar_lea.vmem %s895_s5, 1024  ;;  %s632_s8 = scalar_lea.vmem %s631_s7, 2048 }
  0x3c   : > { %293 = vmatprep.subr.mxu0 %v233_v6  ;;  %525 = vmatprep.subr.mxu1 %v233_v6  ;;  %v216_v20 = vld [vmem:[%s950_s1] sm:$0xff]  ;;  %v218_v21 = vld [vmem:[%s950_s1 + $0x10] sm:$0xff]  ;;  %v241_v26 = vld [vmem:[%s951_s2 + $0x18] sm:$0xff]  ;;  %p627_p11 = scmp.ne.s32.totalorder %s895_s5, %s626_s20  ;;  %p633_p5 = scmp.lt.s32.totalorder %s895_s5, %s631_s7 }
  0x3d   : > { %294 = vmatpush1.msra.mxu0 %v232_v7  ;;  %534 = vmatpush1.msra.mxu1 %v232_v7  ;;  %v240_v22 = vld [vmem:[%s951_s2 + $0x10] sm:$0xff]  ;;  %v238_v23 = vld [vmem:[%s951_s2] sm:$0xff]  ;;  %v239_v27 = vld [vmem:[%s951_s2 + $0x8] sm:$0xff]  ;;  %p634_p7 = scmp.lt.s32.totalorder %s632_s8, %s626_s20 }
  0x3e   : > { %295 = vmatprep.subr.mxu0 %v231_v8  ;;  %526 = vmatprep.subr.mxu1 %v231_v8  ;;  %v373_v28 = vld [vmem:[%s952_s3 + $0x8] sm:$0xff]  ;;  %v372_v29 = vld [vmem:[%s952_s3] sm:$0xff]  ;;  %v375_v30 = vld [vmem:[%s952_s3 + $0x18] sm:$0xff]  ;;  %p628_p13 = pnand %p627_p11, %p961_p12 }
  0x3f   : > { %296 = vmatpush1.msra.mxu0 %v230_v9  ;;  %535 = vmatpush1.msra.mxu1 %v230_v9  ;;  %v374_v31 = vld [vmem:[%s952_s3 + $0x10] sm:$0xff]  ;;  %p635_p8 = por %p634_p7, %p633_p5 }
  0x40   : > { %297 = vmatprep.subr.mxu0 %v229_v10  ;;  %527 = vmatprep.subr.mxu1 %v229_v10  ;;  %p629_p4 = pneg %p628_p13 }
  0x41   : > { %298 = vmatpush1.msra.mxu0 %v228_v11  ;;  %536 = vmatpush1.msra.mxu1 %v228_v11 }
  0x42   : > { %299 = vmatprep.subr.mxu0 %v227_v12  ;;  %528 = vmatprep.subr.mxu1 %v227_v12  ;;  %p636_p10 = pnand %p635_p8, %p629_p4 }
  0x43   : > { %300 = vmatpush1.msra.mxu0 %v226_v13  ;;  %537 = vmatpush1.msra.mxu1 %v226_v13 }
  0x44   : > { %301 = vmatprep.subr.mxu0 %v225_v14  ;;  %529 = vmatprep.subr.mxu1 %v225_v14 }
  0x45   : > { %302 = vmatpush1.msra.mxu0 %v224_v15  ;;  %538 = vmatpush1.msra.mxu1 %v224_v15 }
  0x46   : > { %303 = vmatprep.subr.mxu0 %v223_v16  ;;  %530 = vmatprep.subr.mxu1 %v223_v16 }
  0x47   : > { %304 = vmatpush1.msra.mxu0 %v222_v17  ;;  %539 = vmatpush1.msra.mxu1 %v222_v17 }
  0x48   : > { %305 = vmatprep.subr.mxu0 %v221_v18  ;;  %531 = vmatprep.subr.mxu1 %v221_v18 }
  0x49   : > { %306 = vmatpush1.msra.mxu0 %v220_v19  ;;  %540 = vmatpush1.msra.mxu1 %v220_v19 }
  0x4a   : > { %513 = vmatmul.mubr.msk.f32.vlgmr.msra.gmra.mxu0 %vm262_vm0, %v216_v20  ;;  %515 = vmatmul.mubr.msk.f32.vlgmr.msra.gmra.mxu1 %vm262_vm0, %v218_v21 }
  0x4b   : > { %345 = vmatprep.mubr.f32.mxu0 %v695_v0  ;;  %357 = vmatprep.mubr.f32.mxu1 %v695_v0 }
  0x4c   : > { %254 = vperm.xlu1 %597, %v240_v22   ;;  %244 = vperm.xlu0 %596, %v238_v23  }
  0x4e   : > { %514 = vmatmul.mubr.msk.f32.gmra.mxu0 %vm262_vm0, %v217_v24  ;;  %516 = vmatmul.mubr.msk.f32.gmra.mxu1 %vm262_vm0, %v219_v25 }
  0x50   : > { %259 = vperm.xlu1 %597, %v241_v26   ;;  %249 = vperm.xlu0 %596, %v239_v27  }
  0x54   : > { %383 = vperm.xlu1 %597, %v373_v28   ;;  %378 = vperm.xlu0 %596, %v372_v29  }
  0x58   : > { %393 = vperm.xlu1 %597, %v375_v30   ;;  %388 = vperm.xlu0 %596, %v374_v31  }
  0xc7   : > { %v245_v32 = vpop.permute.xlu0 %244  ;;  %v255_v33 = vpop.permute.xlu1 %254 }
  0xcb   : > { %v250_v34 = vpop.permute.xlu0 %249  ;;  %v260_v35 = vpop.permute.xlu1 %259 }
  0xcf   : > { %v379_v36 = vpop.permute.xlu0 %378  ;;  %v384_v37 = vpop.permute.xlu1 %383 }
  0xd3   : > { %v389_v40 = vpop.permute.xlu0 %388  ;;  %v394_v51 = vpop.permute.xlu1 %393 }
 0x10a   : > { %v341_v38 = vpop.f32.mrf.mxu0  ;;  %v353_v39 = vpop.f32.mrf.mxu1 }
 0x10b   : > { %v342_v41 = vadd.f32 %v341_v38, %v245_v32  ;;  %v354_v42 = vadd.f32 %v353_v39, %v255_v33 }
 0x10c   : > { %v343_v43 = vpop.f32.mrf.mxu0  ;;  %v355_v44 = vpop.f32.mrf.mxu1 }
 0x10d   : > { %vm364_vm1 = vcmp.ge.f32.partialorder %v342_v41, 0.0  ;;  %v396_v45 = vmul.f32 %v379_v36, %v342_v41  ;;  %vm368_vm2 = vcmp.ge.f32.partialorder %v354_v42, 0.0  ;;  %v400_v46 = vmul.f32 %v389_v40, %v354_v42 }
 0x10e   : > { %v344_v47 = vadd.f32 %v343_v43, %v245_v32  ;;  %v356_v48 = vadd.f32 %v355_v44, %v255_v33  ;;  %v347_v49 = vpop.f32.mrf.mxu0  ;;  %v359_v50 = vpop.f32.mrf.mxu1 }
 0x10f   : > { %v404_v52 = vsel %vm364_vm1, %v342_v41, %v396_v45  ;;  %v408_v53 = vsel %vm368_vm2, %v354_v42, %v400_v46  ;;  %v348_v54 = vadd.f32 %v347_v49, %v250_v34  ;;  %v360_v55 = vadd.f32 %v359_v50, %v260_v35 }
 0x110   : > { %412 = vst [vmem:[%s889_s30] sm:$0xff] %v404_v52  ;;  %416 = vst [vmem:[%s889_s30 + $0x20] sm:$0xff] %v408_v53  ;;  %vm365_vm3 = vcmp.ge.f32.partialorder %v344_v47, 0.0  ;;  %v397_v56 = vmul.f32 %v379_v36, %v344_v47  ;;  %vm369_vm4 = vcmp.ge.f32.partialorder %v356_v48, 0.0  ;;  %v401_v57 = vmul.f32 %v389_v40, %v356_v48  ;;  %v349_v58 = vpop.f32.mrf.mxu0  ;;  %v361_v59 = vpop.f32.mrf.mxu1 }
 0x111   : > { %vm366_vm5 = vcmp.ge.f32.partialorder %v348_v54, 0.0  ;;  %v398_v60 = vmul.f32 %v384_v37, %v348_v54  ;;  %vm370_vm6 = vcmp.ge.f32.partialorder %v360_v55, 0.0  ;;  %v402_v61 = vmul.f32 %v394_v51, %v360_v55 }
 0x112   : > { %v405_v62 = vsel %vm365_vm3, %v344_v47, %v397_v56  ;;  %v409_v63 = vsel %vm369_vm4, %v356_v48, %v401_v57  ;;  %v350_v0 = vadd.f32 %v349_v58, %v250_v34  ;;  %v362_v1 = vadd.f32 %v361_v59, %v260_v35 }
 0x113   : > { %413 = vst [vmem:[%s889_s30 + $0x8] sm:$0xff] %v405_v62  ;;  %417 = vst [vmem:[%s889_s30 + $0x28] sm:$0xff] %v409_v63  ;;  %v406_v2 = vsel %vm366_vm5, %v348_v54, %v398_v60  ;;  %v410_v3 = vsel %vm370_vm6, %v360_v55, %v402_v61 }
 0x114   : > { %414 = vst [vmem:[%s889_s30 + $0x10] sm:$0xff] %v406_v2  ;;  %418 = vst [vmem:[%s889_s30 + $0x30] sm:$0xff] %v410_v3  ;;  %vm367_vm7 = vcmp.ge.f32.partialorder %v350_v0, 0.0  ;;  %v399_v4 = vmul.f32 %v384_v37, %v350_v0  ;;  %vm371_vm8 = vcmp.ge.f32.partialorder %v362_v1, 0.0  ;;  %v403_v5 = vmul.f32 %v394_v51, %v362_v1 }
 0x116   : > { %v407_v6 = vsel %vm367_vm7, %v350_v0, %v399_v4  ;;  %v411_v7 = vsel %vm371_vm8, %v362_v1, %v403_v5 }
 0x117   : > { %415 = vst [vmem:[%s889_s30 + $0x18] sm:$0xff] %v407_v6  ;;  %419 = vst [vmem:[%s889_s30 + $0x38] sm:$0xff] %v411_v7 }
 0x118   : > { %639 = shalt.err (!%p636_p10)
}
 0x119   : > { %s640_s10 = scalar_lea.hbm %s904_s13, 1024  ;;  %s644_s23 = scalar_lea.hbm %s953_s4, 2048 }
 0x11a   : > { %p641_p0 = scmp.ne.s32.totalorder %s904_s13, %s640_s10  ;;  %p645_p1 = scmp.lt.s32.totalorder %s904_s13, %s953_s4 }
 0x11b   : > { %p646_p3 = scmp.lt.s32.totalorder %s644_s23, %s640_s10 }
 0x11c   : > { %p642_p2 = pnand %p641_p0, %p961_p12 }
 0x11d   : > { %p647_p6 = por %p646_p3, %p645_p1 }
 0x11e   : > { %p643_p9 = pneg %p642_p2 }
 0x120   : > { %p648_p11 = pnand %p647_p6, %p643_p9 }
 0x122   : > { %651 = shalt.err (!%p648_p11)
}
 0x123   : > { %s698_s30 = smov 256   ;;  %s699_s6 = smov 16  }
 0x124   : > { %546 = dma.vmem_to_hbm [thread:$0]  (%p961_p12), %s895_s5, 1024, %s904_s13, %s421_s14, %s698_s30, %s698_s30, %s699_s6  }
 0x125 PF: > { %s449_s19 = sand.u32 1, %s678_s15   ;;  %p962_p13 = scmp.ne.s32.totalorder %s958_s27, 0 }
 0x126   : > { %p963_p4 = scmp.ge.s32.totalorder %s690_s18, 2  ;;  %s450_s9 = scalar_lea.sflag [#allocation4], %s449_s19 }
 0x128   : > { %p553_p5 = pnand %p963_p4, %p962_p13 }
 0x12a   : > { %p554_p7 = pneg %p553_p5 }
 0x12c   : > { %673 = dma.done.wait (%p554_p7), %s450_s9, 1024  }
 0x12d   : > { %675 = vsyncadd (%p554_p7), %s450_s9, 4294966272  ;;  %p17_p8 = scmp.ge.s32.totalorder %s750_s21, 4   ;;  %s964_s15 = smov %s682_s16 }
 0x12e   : > { %s965_s16 = smov %s686_s17  ;;  %s966_s17 = smov %s762_s24 }
 0x12f   : > { %s967_s18 = smov %s750_s21  ;;  %19 = sbr.rel (!%p17_p8) target bundleno = 5 (0x5), region = 81 }
 0x134   :  { %455 = vsyncpa [#allocation3], 1 }
 0x135   :  { %457 = vsyncpa [#allocation3 + $0x1], 1 }
 0x136   :  { %458 = vsyncpa [#allocation4], 1 }
 0x137   :  { %460 = vsyncpa [#allocation4 + $0x1], 1 }

</bundles_post_ra>
